<compile_context>
chip_gen: v7x
topology: tpu7x:2x2x1
jax: 0.10.0
libtpu: 0.0.40
codegen_flags: <defaults>
</compile_context>

<pallas_src>
import jax
import jax.numpy as jnp
from jax.experimental import pallas as pl
from jax.experimental.pallas import tpu as pltpu

LANE = 128
ROW_ALIGN = 16       # bf16 sublane packing is (16, 128); keeps every block unmasked
HID_PAD = 128        # hidden dims 32 / 32 / 64 all pad to one 128-lane tile


def _round_up(n, m):
    return ((n + m - 1) // m) * m


# ---------------------------------------------------------------------------
# Kernel: fused 4-layer MLP on one (TM, input_dim) batch tile.
# Weights/biases are full (padded) arrays resident in VMEM across grid steps.
# ---------------------------------------------------------------------------
def _mlp_kernel(x_ref, w1_ref, wstack_ref, bstack_ref, o_ref):
    """
    x_ref      : (TM, input_dim)   f32  (cast to bf16 in-kernel; VPU, free)
    w1_ref     : (input_dim, 128)  bf16
    wstack_ref : (3, 128, 128)     bf16 (padded w2, w3, w4)
    bstack_ref : (4, 128)          f32  (padded b1..b4)
    o_ref      : (TM, 128)         bf16 (lane-dense store)
    """
    x = x_ref[...].astype(jnp.bfloat16)

    # linear1 + relu   (input_dim -> 128)
    h = jnp.dot(x, w1_ref[...], preferred_element_type=jnp.float32)
    h = jnp.maximum(h + bstack_ref[0:1, :], 0.0)

    # linear2 + relu   (128 -> 128)
    h = jnp.dot(h.astype(jnp.bfloat16), wstack_ref[0],
                preferred_element_type=jnp.float32)
    h = jnp.maximum(h + bstack_ref[1:2, :], 0.0)

    # linear3 + relu   (128 -> 128)
    h = jnp.dot(h.astype(jnp.bfloat16), wstack_ref[1],
                preferred_element_type=jnp.float32)
    h = jnp.maximum(h + bstack_ref[2:3, :], 0.0)

    # linear4 (no activation)   (128 -> 128, real cols = output_dim)
    out = jnp.dot(h.astype(jnp.bfloat16), wstack_ref[2],
                  preferred_element_type=jnp.float32) + bstack_ref[3:4, :]

    o_ref[...] = out.astype(o_ref.dtype)


# ---------------------------------------------------------------------------
# One-time parameter packing: pad hidden/output feature dims to 128 lanes,
# cast weights to bf16 (MXU operands), keep biases in f32 (VPU add).
# w2/w3/w4 are stacked into one buffer, biases into another, so the kernel
# has only 3 resident parameter streams instead of 8.
# ---------------------------------------------------------------------------
def pack_params(params, input_dim, output_dim):
    assert 1 <= output_dim <= LANE, "this packing assumes output_dim <= 128"
    dout_pad = HID_PAD

    def pad_w(w, rows, cols):
        return jnp.pad(w, ((0, rows - w.shape[0]), (0, cols - w.shape[1])))

    def pad_b(b, cols):
        return jnp.pad(b, (0, cols - b.shape[0]))

    w1 = pad_w(params["w1"], input_dim, HID_PAD).astype(jnp.bfloat16)
    wstack = jnp.stack([
        pad_w(params["w2"], HID_PAD, HID_PAD),
        pad_w(params["w3"], HID_PAD, HID_PAD),
        pad_w(params["w4"], HID_PAD, dout_pad),
    ]).astype(jnp.bfloat16)
    bstack = jnp.stack([
        pad_b(params["b1"], HID_PAD),
        pad_b(params["b2"], HID_PAD),
        pad_b(params["b3"], HID_PAD),
        pad_b(params["b4"], dout_pad),
    ]).astype(jnp.float32)

    packed = {"w1": w1, "wstack": wstack, "bstack": bstack}
    meta = {"input_dim": input_dim, "dout_pad": dout_pad}
    return packed, meta


# ---------------------------------------------------------------------------
# Batch tiling: pad batch only to a 16-row multiple, pick an even tile count
# (>= 2 once the batch spans two row groups, so v7x's two TensorCores both
# get work), and make the tile size divide the padded batch exactly.
# ---------------------------------------------------------------------------
def _choose_batch_tiling(batch, tm_max):
    batch_pad = _round_up(batch, ROW_ALIGN)
    if batch_pad >= 2 * ROW_ALIGN:
        n_tiles = max(pl.cdiv(batch_pad, tm_max), 2)
        if n_tiles % 2:
            n_tiles += 1
    else:
        n_tiles = 1
    tm = _round_up(pl.cdiv(batch_pad, n_tiles), ROW_ALIGN)
    batch_pad = n_tiles * tm
    return tm, n_tiles, batch_pad


# ---------------------------------------------------------------------------
# Forward wrapper: batch-gridded, pipelined pallas_call.
# ---------------------------------------------------------------------------
def net_forward(x, packed, meta, output_dim, *, tm_max=2048):
    batch, in_dim = x.shape
    assert in_dim == meta["input_dim"]
    dout_pad = meta["dout_pad"]

    tm, n_tiles, batch_pad = _choose_batch_tiling(batch, tm_max)

    x_in = x
    if batch_pad != batch:
        x_in = jnp.pad(x, ((0, batch_pad - batch), (0, 0)))

    const2d = lambda i: (0, 0)
    in_specs = [
        pl.BlockSpec((tm, in_dim), lambda i: (i, 0)),          # x tile (unpadded feature dim)
        pl.BlockSpec((in_dim, HID_PAD), const2d),              # w1
        pl.BlockSpec((3, HID_PAD, HID_PAD), lambda i: (0, 0, 0)),  # w2/w3/w4
        pl.BlockSpec((4, HID_PAD), const2d),                   # b1..b4
    ]
    out_spec = pl.BlockSpec((tm, dout_pad), lambda i: (i, 0))

    # Advisory cost estimate (padded GEMM chain) for XLA scheduling.
    flops = 2 * batch_pad * (in_dim * HID_PAD + 2 * HID_PAD * HID_PAD
                             + HID_PAD * dout_pad)
    bytes_accessed = (x_in.size * x_in.dtype.itemsize
                      + packed["w1"].size * 2
                      + packed["wstack"].size * 2
                      + packed["bstack"].size * 4
                      + batch_pad * dout_pad * 2)
    cost = pl.CostEstimate(flops=flops, transcendentals=0,
                           bytes_accessed=bytes_accessed)

    out_padded = pl.pallas_call(
        _mlp_kernel,
        out_shape=jax.ShapeDtypeStruct((batch_pad, dout_pad), jnp.bfloat16),
        grid=(n_tiles,),
        in_specs=in_specs,
        out_specs=out_spec,
        compiler_params=pltpu.CompilerParams(
            dimension_semantics=("parallel",),
            vmem_limit_bytes=32 * 1024 * 1024),
        cost_estimate=cost,
    )(x_in, packed["w1"], packed["wstack"], packed["bstack"])

    # NOTE: downstream consumers that can take the padded (batch_pad, 128)
    # bf16 slab should consume it directly; this slice is a separate XLA op.
    return out_padded[:batch, :output_dim]


# ---------------------------------------------------------------------------
# Param init (PyTorch nn.Linear-style uniform(-1/sqrt(fan_in), +)).
# Weights stored (in, out) so the kernel computes y = x @ W + b.
# ---------------------------------------------------------------------------
def init_params(key, input_dim, output_dim):
    dims = [(input_dim, 32), (32, 32), (32, 64), (64, output_dim)]
    params = {}
    for i, (fan_in, fan_out) in enumerate(dims, start=1):
        key, kw, kb = jax.random.split(key, 3)
        bound = 1.0 / jnp.sqrt(jnp.float32(fan_in))
        params[f"w{i}"] = jax.random.uniform(
            kw, (fan_in, fan_out), jnp.float32, minval=-bound, maxval=bound)
        params[f"b{i}"] = jax.random.uniform(
            kb, (fan_out,), jnp.float32, minval=-bound, maxval=bound)
    return params


def _reference_forward_f32(x, params):
    h = jnp.maximum(x @ params["w1"] + params["b1"], 0.0)
    h = jnp.maximum(h @ params["w2"] + params["b2"], 0.0)
    h = jnp.maximum(h @ params["w3"] + params["b3"], 0.0)
    return h @ params["w4"] + params["b4"]


def _reference_forward_bf16(x, params):
    # Emulates the kernel's bf16-operand / f32-accumulation / bf16-output math.
    def lin(a, w, b):
        return jnp.dot(a.astype(jnp.bfloat16), w.astype(jnp.bfloat16),
                       preferred_element_type=jnp.float32) + b
    h = jnp.maximum(lin(x, params["w1"], params["b1"]), 0.0)
    h = jnp.maximum(lin(h, params["w2"], params["b2"]), 0.0)
    h = jnp.maximum(lin(h, params["w3"], params["b3"]), 0.0)
    return lin(h, params["w4"], params["b4"]).astype(jnp.bfloat16)


if __name__ == "__main__":
    key = jax.random.PRNGKey(0)
    input_dim, output_dim = 16, 4
    kp, kx1, kx2 = jax.random.split(key, 3)

    params = init_params(kp, input_dim, output_dim)
    packed, meta = pack_params(params, input_dim, output_dim)

    # Case 1: small batch (single-tile path).
    x1 = jax.random.normal(kx1, (8, input_dim), jnp.float32)
    y1 = net_forward(x1, packed, meta, output_dim)
    jax.block_until_ready(y1)
    assert y1.shape == (8, output_dim)
    assert y1.dtype == jnp.bfloat16

    # Case 2: batch spanning >= 2 grid tiles (exercises batch padding and the
    # megacore-parallel multi-tile path).
    x2 = jax.random.normal(kx2, (100, input_dim), jnp.float32)
    y2 = net_forward(x2, packed, meta, output_dim)
    jax.block_until_ready(y2)
    assert y2.shape == (100, output_dim)

    for x, y in ((x1, y1), (x2, y2)):
        y_f32 = y.astype(jnp.float32)
        # Tight check vs a reference using the same bf16-operand / bf16-output
        # arithmetic as the kernel.
        ref_bf16 = _reference_forward_bf16(x, params).astype(jnp.float32)
        assert jnp.allclose(y_f32, ref_bf16, atol=2e-2, rtol=2e-2)
        # Loose check vs the pure-f32 PyTorch-equivalent forward (bf16
        # operand/output rounding perturbs results slightly).
        ref_f32 = _reference_forward_f32(x, params)
        assert jnp.allclose(y_f32, ref_f32, atol=5e-2, rtol=5e-2)

    print("KERNEL_OK")
</pallas_src>

<mosaic_0001>
module attributes {stable_mosaic.version = 11 : i64} {
  func.func @_mlp_kernel(%arg0: i32, %arg1: memref<16x16xf32, #tpu.memory_space<vmem>>, %arg2: memref<16x128xbf16, #tpu.memory_space<vmem>>, %arg3: memref<3x128x128xbf16, #tpu.memory_space<vmem>>, %arg4: memref<4x128xf32, #tpu.memory_space<vmem>>, %arg5: memref<16x128xbf16, #tpu.memory_space<vmem>>) attributes {dimension_semantics = [#tpu.dimension_semantics<parallel>], iteration_bounds = array<i64: 1>, scalar_prefetch = 0 : i64, scratch_operands = 0 : i64, tpu.core_type = #tpu.core_type<tc>, window_params = [{transform_indices = @transform_0, window_bounds = array<i64: 16, 16>}, {pipeline_mode = #tpu.pipeline_mode<synchronous>, transform_indices = @transform_1, window_bounds = array<i64: 16, 128>}, {pipeline_mode = #tpu.pipeline_mode<synchronous>, transform_indices = @transform_2, window_bounds = array<i64: 3, 128, 128>}, {pipeline_mode = #tpu.pipeline_mode<synchronous>, transform_indices = @transform_3, window_bounds = array<i64: 4, 128>}, {transform_indices = @transform_4, window_bounds = array<i64: 16, 128>}]} {
    %c0 = arith.constant 0 : index
    %c0_0 = arith.constant 0 : index
    %0 = vector.load %arg1[%c0, %c0_0] : memref<16x16xf32, #tpu.memory_space<vmem>>, vector<16x16xf32>
    %1 = arith.truncf %0 : vector<16x16xf32> to vector<16x16xbf16>
    %c0_1 = arith.constant 0 : index
    %c0_2 = arith.constant 0 : index
    %2 = vector.load %arg2[%c0_1, %c0_2] : memref<16x128xbf16, #tpu.memory_space<vmem>>, vector<16x128xbf16>
    %cst = arith.constant dense<0.000000e+00> : vector<16x128xf32>
    %3 = tpu.matmul %1, %2, %cst {dimension_numbers = #tpu.dot_dimension_numbers<[1], [0], [0], [1], [0, 0, 1, 1], [], []>} : vector<16x16xbf16>, vector<16x128xbf16>, vector<16x128xf32> -> vector<16x128xf32>
    %c0_3 = arith.constant 0 : index
    %c0_4 = arith.constant 0 : index
    %4 = vector.load %arg4[%c0_3, %c0_4] : memref<4x128xf32, #tpu.memory_space<vmem>>, vector<1x128xf32>
    %5 = vector.broadcast %4 : vector<1x128xf32> to vector<16x128xf32>
    %6 = arith.addf %3, %5 : vector<16x128xf32>
    %cst_5 = arith.constant 0.000000e+00 : f32
    %7 = vector.broadcast %cst_5 : f32 to vector<16x128xf32>
    %8 = arith.maximumf %6, %7 : vector<16x128xf32>
    %9 = arith.truncf %8 : vector<16x128xf32> to vector<16x128xbf16>
    %c0_6 = arith.constant 0 : index
    %c0_7 = arith.constant 0 : index
    %c0_8 = arith.constant 0 : index
    %10 = vector.load %arg3[%c0_6, %c0_7, %c0_8] : memref<3x128x128xbf16, #tpu.memory_space<vmem>>, vector<1x128x128xbf16>
    %11 = vector.shape_cast %10 : vector<1x128x128xbf16> to vector<128x128xbf16>
    %cst_9 = arith.constant dense<0.000000e+00> : vector<16x128xf32>
    %12 = tpu.matmul %9, %11, %cst_9 {dimension_numbers = #tpu.dot_dimension_numbers<[1], [0], [0], [1], [0, 0, 1, 1], [], []>} : vector<16x128xbf16>, vector<128x128xbf16>, vector<16x128xf32> -> vector<16x128xf32>
    %c1 = arith.constant 1 : index
    %c0_10 = arith.constant 0 : index
    %13 = vector.load %arg4[%c1, %c0_10] : memref<4x128xf32, #tpu.memory_space<vmem>>, vector<1x128xf32>
    %14 = vector.broadcast %13 : vector<1x128xf32> to vector<16x128xf32>
    %15 = arith.addf %12, %14 : vector<16x128xf32>
    %cst_11 = arith.constant 0.000000e+00 : f32
    %16 = vector.broadcast %cst_11 : f32 to vector<16x128xf32>
    %17 = arith.maximumf %15, %16 : vector<16x128xf32>
    %18 = arith.truncf %17 : vector<16x128xf32> to vector<16x128xbf16>
    %c1_12 = arith.constant 1 : index
    %c0_13 = arith.constant 0 : index
    %c0_14 = arith.constant 0 : index
    %19 = vector.load %arg3[%c1_12, %c0_13, %c0_14] : memref<3x128x128xbf16, #tpu.memory_space<vmem>>, vector<1x128x128xbf16>
    %20 = vector.shape_cast %19 : vector<1x128x128xbf16> to vector<128x128xbf16>
    %cst_15 = arith.constant dense<0.000000e+00> : vector<16x128xf32>
    %21 = tpu.matmul %18, %20, %cst_15 {dimension_numbers = #tpu.dot_dimension_numbers<[1], [0], [0], [1], [0, 0, 1, 1], [], []>} : vector<16x128xbf16>, vector<128x128xbf16>, vector<16x128xf32> -> vector<16x128xf32>
    %c2 = arith.constant 2 : index
    %c0_16 = arith.constant 0 : index
    %22 = vector.load %arg4[%c2, %c0_16] : memref<4x128xf32, #tpu.memory_space<vmem>>, vector<1x128xf32>
    %23 = vector.broadcast %22 : vector<1x128xf32> to vector<16x128xf32>
    %24 = arith.addf %21, %23 : vector<16x128xf32>
    %cst_17 = arith.constant 0.000000e+00 : f32
    %25 = vector.broadcast %cst_17 : f32 to vector<16x128xf32>
    %26 = arith.maximumf %24, %25 : vector<16x128xf32>
    %27 = arith.truncf %26 : vector<16x128xf32> to vector<16x128xbf16>
    %c2_18 = arith.constant 2 : index
    %c0_19 = arith.constant 0 : index
    %c0_20 = arith.constant 0 : index
    %28 = vector.load %arg3[%c2_18, %c0_19, %c0_20] : memref<3x128x128xbf16, #tpu.memory_space<vmem>>, vector<1x128x128xbf16>
    %29 = vector.shape_cast %28 : vector<1x128x128xbf16> to vector<128x128xbf16>
    %cst_21 = arith.constant dense<0.000000e+00> : vector<16x128xf32>
    %30 = tpu.matmul %27, %29, %cst_21 {dimension_numbers = #tpu.dot_dimension_numbers<[1], [0], [0], [1], [0, 0, 1, 1], [], []>} : vector<16x128xbf16>, vector<128x128xbf16>, vector<16x128xf32> -> vector<16x128xf32>
    %c3 = arith.constant 3 : index
    %c0_22 = arith.constant 0 : index
    %31 = vector.load %arg4[%c3, %c0_22] : memref<4x128xf32, #tpu.memory_space<vmem>>, vector<1x128xf32>
    %32 = vector.broadcast %31 : vector<1x128xf32> to vector<16x128xf32>
    %33 = arith.addf %30, %32 : vector<16x128xf32>
    %34 = arith.truncf %33 : vector<16x128xf32> to vector<16x128xbf16>
    %c0_23 = arith.constant 0 : index
    %c0_24 = arith.constant 0 : index
    %35 = vector.load %arg5[%c0_23, %c0_24] : memref<16x128xbf16, #tpu.memory_space<vmem>>, vector<16x128xbf16>
    tpu.vector_store %arg5[%c0_23, %c0_24], %34 {strides = array<i32>} : memref<16x128xbf16, #tpu.memory_space<vmem>>, vector<16x128xbf16>,
    return
  }
  func.func @transform_0(%arg0: i32) -> (i32, i32) {
    %c0_i32 = arith.constant 0 : i32
    %c0_i32_0 = arith.constant 0 : i32
    return %arg0, %c0_i32 : i32, i32
  }
  func.func @transform_1(%arg0: i32) -> (i32, i32) {
    %c0_i32 = arith.constant 0 : i32
    %c0_i32_0 = arith.constant 0 : i32
    %c0_i32_1 = arith.constant 0 : i32
    return %c0_i32, %c0_i32_0 : i32, i32
  }
  func.func @transform_2(%arg0: i32) -> (i32, i32, i32) {
    %c0_i32 = arith.constant 0 : i32
    %c0_i32_0 = arith.constant 0 : i32
    %c0_i32_1 = arith.constant 0 : i32
    %c0_i32_2 = arith.constant 0 : i32
    return %c0_i32, %c0_i32_0, %c0_i32_1 : i32, i32, i32
  }
  func.func @transform_3(%arg0: i32) -> (i32, i32) {
    %c0_i32 = arith.constant 0 : i32
    %c0_i32_0 = arith.constant 0 : i32
    %c0_i32_1 = arith.constant 0 : i32
    return %c0_i32, %c0_i32_0 : i32, i32
  }
  func.func @transform_4(%arg0: i32) -> (i32, i32) {
    %c0_i32 = arith.constant 0 : i32
    %c0_i32_0 = arith.constant 0 : i32
    return %arg0, %c0_i32 : i32, i32
  }
}

</mosaic_0001>

<bundles_post_ra>
// kernel: tpu_custom_call.1
= control target key start
LH: loop header
LB: loop body
LE: loop exit
PB: predicated region body
PF: predicated region fallthrough
CT: control target
= control target key end

     0   :  { %9 = vsyncpa [#allocation3], 0  ;;  %s890_s0 = inlined_call_operand.hbm [shape: f32[16,16], index: 0, kind: input, shape index: {}]   ;;  %s891_s1 = inlined_call_operand.hbm [shape: bf16[16,128], index: 1, kind: input, shape index: {}]   ;;  %s892_s2 = inlined_call_operand.hbm [shape: bf16[3,128,128], index: 2, kind: input, shape index: {}]   ;;  %s893_s3 = inlined_call_operand.vmem [shape: f32[4,128], index: 3, kind: input, shape index: {}]   ;;  %s894_s4 = inlined_call_operand.hbm [shape: bf16[16,128], index: 4, kind: output, shape index: {}]  }
   0x1   :  { %10 = vsyncpa [#allocation6], 0 }
   0x2   :  { %11 = vsyncpa [#allocation4], 0  ;;  %s753_s15 = smov [#allocation5]   ;;  %s659_s19 = scalar_lea.hbm %s891_s1, 128 }
   0x3   :  { %s29_s16 = sshll.u32 %s753_s15, 4  ;;  %p660_p0 = scmp.ne.s32.totalorder %s891_s1, %s659_s19  ;;  %s30_s16 = int_to_ptr.vmem [resolvable:$true] %s29_s16 }
   0x4   :  { %p663_p1 = scmp.lt.u32.totalorder %s659_s19, %s891_s1 }
   0x6   :  { %p665_p2 = pnand %p663_p1, %p660_p0 }
   0x8   :  { %668 = shalt.err (!%p665_p2)
}
   0x9   :  { %s669_s24 = scalar_lea.vmem %s30_s16, 128  ;;  %p674_p4 = scmp.lt.s32.totalorder %s30_s16, %s30_s16 }
   0xa   :  { %p670_p3 = scmp.ne.s32.totalorder %s30_s16, %s669_s24  ;;  %p675_p5 = scmp.lt.s32.totalorder %s669_s24, %s669_s24 }
   0xc   :  { %p676_p6 = por %p675_p5, %p674_p4 }
   0xe   :  { %p677_p7 = pnand %p676_p6, %p670_p3 }
  0x10   :  { %680 = shalt.err (!%p677_p7)
}
  0x11   :  { %s754_s25 = smov 64   ;;  %s755_s26 = smov 4  }
  0x12   :  { %35 = dma.hbm_to_vmem [thread:$0]  %s891_s1, 128, %s30_s16, [#allocation6], %s754_s25, %s754_s25, %s755_s26  }
  0x13   :  { %s756_s29 = smov [#allocation2]   ;;  %s681_s7 = scalar_lea.hbm %s890_s0, 256 }
  0x14   :  { %s17_s30 = sshll.u32 %s756_s29, 4  ;;  %p682_p8 = scmp.ne.s32.totalorder %s890_s0, %s681_s7  ;;  %s18_s30 = int_to_ptr.vmem [resolvable:$true] %s17_s30 }
  0x15   :  { %p685_p9 = scmp.lt.u32.totalorder %s681_s7, %s890_s0 }
  0x17   :  { %p687_p10 = pnand %p685_p9, %p682_p8 }
  0x19   :  { %690 = shalt.err (!%p687_p10)
}
  0x1a   :  { %s691_s12 = scalar_lea.vmem %s18_s30, 256  ;;  %p696_p12 = scmp.lt.s32.totalorder %s18_s30, %s18_s30 }
  0x1b   :  { %p692_p11 = scmp.ne.s32.totalorder %s18_s30, %s691_s12  ;;  %p697_p13 = scmp.lt.s32.totalorder %s691_s12, %s691_s12 }
  0x1d   :  { %p698_p0 = por %p697_p13, %p696_p12 }
  0x1f   :  { %p699_p1 = pnand %p698_p0, %p692_p11 }
  0x21   :  { %702 = shalt.err (!%p699_p1)
}
  0x22   :  { %s757_s1 = smov 128   ;;  %s758_s13 = smov 8  }
  0x23   :  { %23 = dma.hbm_to_vmem [thread:$0]  %s890_s0, 256, %s18_s30, [#allocation3], %s757_s1, %s757_s1, %s758_s13  }
  0x24   :  { %s759_s16 = smov [#allocation7]   ;;  %s703_s20 = scalar_lea.hbm %s892_s2, 3072 }
  0x25   :  { %s41_s17 = sshll.u32 %s759_s16, 4  ;;  %p704_p2 = scmp.ne.s32.totalorder %s892_s2, %s703_s20  ;;  %s42_s17 = int_to_ptr.vmem [resolvable:$true] %s41_s17 }
  0x26   :  { %p707_p3 = scmp.lt.u32.totalorder %s703_s20, %s892_s2 }
  0x28   :  { %p709_p4 = pnand %p707_p3, %p704_p2 }
  0x2a   :  { %712 = shalt.err (!%p709_p4)
}
  0x2b   :  { %s713_s27 = scalar_lea.vmem %s42_s17, 3072  ;;  %p718_p6 = scmp.lt.s32.totalorder %s42_s17, %s42_s17 }
  0x2c   :  { %p714_p5 = scmp.ne.s32.totalorder %s42_s17, %s713_s27  ;;  %p719_p7 = scmp.lt.s32.totalorder %s713_s27, %s713_s27 }
  0x2e   :  { %p720_p8 = por %p719_p7, %p718_p6 }
  0x30   :  { %p721_p9 = pnand %p720_p8, %p714_p5 }
  0x32   :  { %724 = shalt.err (!%p721_p9)
}
  0x33   :  { %47 = dma.hbm_to_vmem [thread:$0]  %s892_s2, 3072, %s42_s17, [#allocation6], %s754_s25, %s754_s25, %s755_s26  }
  0x34   :  { %747 = dma.done.wait [#allocation3], 256  }
  0x35   :  { %748 = vsyncadd [#allocation3], 4294967040 }
  0x36   :  { %749 = dma.done.wait [#allocation6], 3200  }
  0x37   :  { %750 = vsyncadd [#allocation6], 4294964096  ;;  %v760_v0 = vmov 0.0   ;;  %vm761_vm0 = vmmov 0   ;;  %v634_v1 = vld [vmem:[#allocation5] sm:$0xff]   ;;  %v60_v2 = vld [vmem:[#allocation2] sm:$0xff] }
  0x38   :  { %558 = vmatprep.subr.bf16.mxu0 %v760_v0  ;;  %560 = vmatprep.mubr.msk.bf16.mxu0 %vm761_vm0, %v760_v0  ;;  %v61_v3 = vld [vmem:[#allocation2 + $0x8] sm:$0xff]  ;;  %vm76_vm1 = vcmask 130048   ;;  %v635_v5 = vld [vmem:[#allocation7] sm:$0xff]   ;;  %v636_v6 = vld [vmem:[#allocation7 + $0x8] sm:$0xff]   ;;  %s762_s10 = smov [#allocation8]  }
  0x39   :  { %564 = vmatprep.subr.bf16.mxu1 %v760_v0  ;;  %580 = vmatprep.mubr.msk.bf16.mxu1 %vm761_vm0, %v760_v0  ;;  %v62_v4 = vpack.c.bf16 %v61_v3, %v60_v2  ;;  %v637_v7 = vld [vmem:[#allocation7 + $0x10] sm:$0xff]   ;;  %v638_v8 = vld [vmem:[#allocation7 + $0x18] sm:$0xff]   ;;  %v639_v9 = vld [vmem:[#allocation7 + $0x20] sm:$0xff]   ;;  %s477_s11 = sshll.u32 %s762_s10, 4  ;;  %s478_s11 = int_to_ptr.vmem [resolvable:$true] %s477_s11 }
  0x3a   :  { %559 = vmatpush3.bf16.msra.mxu0 %v634_v1  ;;  %565 = vmatpush3.bf16.msra.mxu1 %v635_v5  ;;  %v640_v10 = vld [vmem:[#allocation7 + $0x28] sm:$0xff]   ;;  %v641_v11 = vld [vmem:[#allocation7 + $0x30] sm:$0xff]   ;;  %v642_v12 = vld [vmem:[#allocation7 + $0x38] sm:$0xff]   ;;  %s725_s12 = scalar_lea.vmem %s478_s11, 128  ;;  %p730_p11 = scmp.lt.s32.totalorder %s478_s11, %s478_s11 }
  0x3b   :  { %584 = vmatprep.subr.bf16.mxu0 %v760_v0  ;;  %566 = vmatprep.subr.bf16.mxu1 %v760_v0  ;;  %v643_v13 = vld [vmem:[#allocation7 + $0x40] sm:$0xff]   ;;  %v644_v14 = vld [vmem:[#allocation7 + $0x48] sm:$0xff]   ;;  %v645_v15 = vld [vmem:[#allocation7 + $0x50] sm:$0xff]   ;;  %p726_p10 = scmp.ne.s32.totalorder %s478_s11, %s725_s12  ;;  %p731_p12 = scmp.lt.s32.totalorder %s725_s12, %s725_s12 }
  0x3c   :  { %v646_v16 = vld [vmem:[#allocation7 + $0x58] sm:$0xff]   ;;  %v647_v17 = vld [vmem:[#allocation7 + $0x60] sm:$0xff]   ;;  %v648_v18 = vld [vmem:[#allocation7 + $0x68] sm:$0xff]  }
  0x3d   :  { %561 = vmatmul.mubr.msk.bf16.vlgmr.msra.gmra.mrb[0].mxu0 %vm76_vm1, %v62_v4  ;;  %v490_v19 = vld [vmem:[%s893_s3] ss:$0 sm:$0xff]  ;;  %v649_v29 = vld [vmem:[#allocation7 + $0x70] sm:$0xff]   ;;  %v650_v30 = vld [vmem:[#allocation7 + $0x78] sm:$0xff]   ;;  %p732_p13 = por %p731_p12, %p730_p11 }
  0x3e   :  { %600 = vmatprep.mubr.msk.bf16.mxu0 %vm761_vm0, %v760_v0  ;;  %567 = vmatpush3.bf16.msra.mxu1 %v636_v6  ;;  %v651_v31 = vld [vmem:[#allocation7 + $0x80] sm:$0xff]   ;;  %v652_v32 = vld [vmem:[#allocation7 + $0x88] sm:$0xff]   ;;  %v653_v33 = vld [vmem:[#allocation7 + $0x90] sm:$0xff]  }
  0x3f   :  { %568 = vmatprep.subr.bf16.mxu1 %v760_v0  ;;  %585 = vmatpush3.bf16.msra.mxu0 %v643_v13  ;;  %v654_v34 = vld [vmem:[#allocation7 + $0x98] sm:$0xff]   ;;  %v655_v35 = vld [vmem:[#allocation7 + $0xa0] sm:$0xff]   ;;  %v656_v36 = vld [vmem:[#allocation7 + $0xa8] sm:$0xff]   ;;  %p733_p0 = pnand %p732_p13, %p726_p10 }
  0x40   :  { %586 = vmatprep.subr.bf16.mxu0 %v760_v0  ;;  %v493_v37 = vld [vmem:[%s893_s3 + $0x1] ss:$0 sm:$0xff]  ;;  %v657_v47 = vld [vmem:[#allocation7 + $0xb0] sm:$0xff]   ;;  %v658_v48 = vld [vmem:[#allocation7 + $0xb8] sm:$0xff]  }
  0x41   :  { %v502_v49 = vld [vmem:[%s893_s3 + $0x2] ss:$0 sm:$0xff]  ;;  %v511_v59 = vld [vmem:[%s893_s3 + $0x3] ss:$0 sm:$0xff] }
  0x42   :  { %569 = vmatpush3.bf16.msra.mxu1 %v637_v7 }
  0x43   :  { %570 = vmatprep.subr.bf16.mxu1 %v760_v0  ;;  %587 = vmatpush3.bf16.msra.mxu0 %v644_v14 }
  0x44   :  { %588 = vmatprep.subr.bf16.mxu0 %v760_v0 }
  0x46   :  { %571 = vmatpush3.bf16.msra.mxu1 %v638_v8 }
  0x47   :  { %572 = vmatprep.subr.bf16.mxu1 %v760_v0  ;;  %589 = vmatpush3.bf16.msra.mxu0 %v645_v15 }
  0x48   :  { %590 = vmatprep.subr.bf16.mxu0 %v760_v0 }
  0x4a   :  { %573 = vmatpush3.bf16.msra.mxu1 %v639_v9 }
  0x4b   :  { %574 = vmatprep.subr.bf16.mxu1 %v760_v0  ;;  %591 = vmatpush3.bf16.msra.mxu0 %v646_v16 }
  0x4c   :  { %592 = vmatprep.subr.bf16.mxu0 %v760_v0 }
  0x4e   :  { %575 = vmatpush3.bf16.msra.mxu1 %v640_v10 }
  0x4f   :  { %576 = vmatprep.subr.bf16.mxu1 %v760_v0  ;;  %593 = vmatpush3.bf16.msra.mxu0 %v647_v17 }
  0x50   :  { %594 = vmatprep.subr.bf16.mxu0 %v760_v0 }
  0x52   :  { %577 = vmatpush3.bf16.msra.mxu1 %v641_v11 }
  0x53   :  { %578 = vmatprep.subr.bf16.mxu1 %v760_v0  ;;  %595 = vmatpush3.bf16.msra.mxu0 %v648_v18 }
  0x54   :  { %596 = vmatprep.subr.bf16.mxu0 %v760_v0 }
  0x56   :  { %579 = vmatpush3.bf16.msra.mxu1 %v642_v12 }
  0x57   :  { %604 = vmatprep.subr.bf16.mxu1 %v760_v0  ;;  %597 = vmatpush3.bf16.msra.mxu0 %v649_v29 }
  0x58   :  { %598 = vmatprep.subr.bf16.mxu0 %v760_v0 }
  0x5b   :  { %599 = vmatpush3.bf16.msra.mxu0 %v650_v30 }
 0x110   :  { %v114_v20 = vpop.f32.mrb[0].mxu0 }
 0x111   :  { %v115_v21 = vadd.f32 %v490_v19, %v114_v20  ;;  %v562_v22 = vpop.f32.mrb[1].mxu0 }
 0x112   :  { %v117_v23 = vpop.f32.mrb[2].mxu0 }
 0x113   :  { %v118_v24 = vadd.f32 %v490_v19, %v117_v23  ;;  %v563_v25 = vpop.f32.mrb[3].mxu0  ;;  %v121_v26 = vmax.f32 %v115_v21, 0.0 }
 0x115   :  { %v122_v27 = vmax.f32 %v118_v24, 0.0 }
 0x117   :  { %v123_v28 = vpack.c.bf16 %v122_v27, %v121_v26 }
 0x119   :  { %581 = vmatmul.mubr.bf16.vlgmr.msra.gmra.mrb[0].mxu1 %v123_v28 }
 0x11a   :  { %620 = vmatprep.mubr.msk.bf16.mxu1 %vm761_vm0, %v760_v0  ;;  %605 = vmatpush3.bf16.msra.mxu1 %v651_v31 }
 0x11b   :  { %606 = vmatprep.subr.bf16.mxu1 %v760_v0 }
 0x11e   :  { %607 = vmatpush3.bf16.msra.mxu1 %v652_v32 }
 0x11f   :  { %608 = vmatprep.subr.bf16.mxu1 %v760_v0 }
 0x122   :  { %609 = vmatpush3.bf16.msra.mxu1 %v653_v33 }
 0x123   :  { %610 = vmatprep.subr.bf16.mxu1 %v760_v0 }
 0x126   :  { %611 = vmatpush3.bf16.msra.mxu1 %v654_v34 }
 0x127   :  { %612 = vmatprep.subr.bf16.mxu1 %v760_v0 }
 0x12a   :  { %613 = vmatpush3.bf16.msra.mxu1 %v655_v35 }
 0x12b   :  { %614 = vmatprep.subr.bf16.mxu1 %v760_v0 }
 0x12e   :  { %615 = vmatpush3.bf16.msra.mxu1 %v656_v36 }
 0x12f   :  { %616 = vmatprep.subr.bf16.mxu1 %v760_v0 }
 0x132   :  { %617 = vmatpush3.bf16.msra.mxu1 %v657_v47 }
 0x133   :  { %618 = vmatprep.subr.bf16.mxu1 %v760_v0 }
 0x136   :  { %619 = vmatpush3.bf16.msra.mxu1 %v658_v48 }
 0x1ec   :  { %v227_v38 = vpop.f32.mrb[0].mxu1 }
 0x1ed   :  { %v228_v39 = vadd.f32 %v493_v37, %v227_v38  ;;  %v582_v40 = vpop.f32.mrb[1].mxu1 }
 0x1ee   :  { %v230_v41 = vpop.f32.mrb[2].mxu1 }
 0x1ef   :  { %v231_v42 = vadd.f32 %v493_v37, %v230_v41  ;;  %v583_v43 = vpop.f32.mrb[3].mxu1  ;;  %v234_v44 = vmax.f32 %v228_v39, 0.0 }
 0x1f1   :  { %v235_v45 = vmax.f32 %v231_v42, 0.0 }
 0x1f3   :  { %v236_v46 = vpack.c.bf16 %v235_v45, %v234_v44 }
 0x1f5   :  { %601 = vmatmul.mubr.bf16.vlgmr.msra.gmra.mrb[4].mxu0 %v236_v46 }
 0x2c8   :  { %v341_v50 = vpop.f32.mrb[4].mxu0 }
 0x2c9   :  { %v342_v51 = vadd.f32 %v502_v49, %v341_v50  ;;  %v602_v52 = vpop.f32.mrb[5].mxu0 }
 0x2ca   :  { %v344_v53 = vpop.f32.mrb[6].mxu0 }
 0x2cb   :  { %v345_v54 = vadd.f32 %v502_v49, %v344_v53  ;;  %v603_v55 = vpop.f32.mrb[7].mxu0  ;;  %v348_v56 = vmax.f32 %v342_v51, 0.0 }
 0x2cd   :  { %v349_v57 = vmax.f32 %v345_v54, 0.0 }
 0x2cf   :  { %v350_v58 = vpack.c.bf16 %v349_v57, %v348_v56 }
 0x2d1   :  { %621 = vmatmul.mubr.bf16.vlgmr.msra.gmra.mrb[4].mxu1 %v350_v58 }
 0x3a4   :  { %v455_v60 = vpop.f32.mrb[4].mxu1 }
 0x3a5   :  { %v622_v61 = vpop.f32.mrb[5].mxu1  ;;  %v456_v63 = vadd.f32 %v511_v59, %v455_v60 }
 0x3a6   :  { %v458_v62 = vpop.f32.mrb[6].mxu1 }
 0x3a7   :  { %v459_v0 = vadd.f32 %v511_v59, %v458_v62  ;;  %v623_v1 = vpop.f32.mrb[7].mxu1 }
 0x3a9   :  { %v527_v2 = vpack.c.bf16 %v459_v0, %v456_v63 }
 0x3ab   :  { %528 = vst [vmem:[#allocation8] sm:$0xff] %v527_v2  }
 0x3ac   :  { %736 = shalt.err (!%p733_p0)
}
 0x3ad   :  { %s737_s13 = scalar_lea.hbm %s894_s4, 128 }
 0x3ae   :  { %p738_p1 = scmp.ne.s32.totalorder %s894_s4, %s737_s13  ;;  %p741_p2 = scmp.lt.u32.totalorder %s737_s13, %s894_s4 }
 0x3b0   :  { %p743_p3 = pnand %p741_p2, %p738_p1 }
 0x3b2   :  { %746 = shalt.err (!%p743_p3)
}
 0x3b3   :  { %483 = dma.vmem_to_hbm [thread:$0]  %s478_s11, 128, %s894_s4, [#allocation4], %s754_s25, %s754_s25, %s755_s26  }
 0x3b4   :  { %751 = dma.done.wait [#allocation4], 128  }
 0x3b5   :  { %752 = vsyncadd [#allocation4], 4294967168 }
 0x3b6   :  { %487 = vsyncpa [#allocation3], 1 }
 0x3b7   :  { %488 = vsyncpa [#allocation6], 1 }
 0x3b8   :  { %489 = vsyncpa [#allocation4], 1 }

</bundles_post_ra>
